<compile_context>
chip_gen: v5e
topology: v5e:2x2
jax: 0.10.0
libtpu: 0.0.40
codegen_flags: <defaults>
</compile_context>

<pallas_src>
import functools

import numpy as np
import jax
import jax.numpy as jnp
from jax.experimental import pallas as pl
from jax.experimental.pallas import tpu as pltpu


# --------------------------------------------------------------------------------------
# Pallas kernel: fused im2col-matmul (patch embedding), bf16 MXU / f32 accumulate
# --------------------------------------------------------------------------------------

def _patch_embed_kernel(x_ref, w_ref, b_ref, o_ref):
    # x_ref: (tm, K)  f32  -- row tile of im2col'd patches (cast to bf16 for the MXU)
    # w_ref: (K, C)   bf16 -- conv weight flattened (cin, kh, kw) x C, VMEM-resident
    # b_ref: (1, C)   f32
    # o_ref: (tm, C)  f32
    x = x_ref[...].astype(jnp.bfloat16)
    acc = jnp.dot(x, w_ref[...], preferred_element_type=jnp.float32)
    o_ref[...] = acc + b_ref[...]


def _pick_row_tile(m, cap=512):
    """Largest multiple-of-8 divisor of m (capped, and leaving >=2 grid steps if possible)."""
    cap_eff = min(cap, m // 2) if m >= 16 else m
    best = None
    for t in range(8, cap_eff + 1, 8):
        if m % t == 0:
            best = t
    return best if best is not None else m   # block == full dim is always legal


def _patch_embed_matmul(xp, w, b, tm):
    m, k = xp.shape
    c = w.shape[1]
    return pl.pallas_call(
        _patch_embed_kernel,
        out_shape=jax.ShapeDtypeStruct((m, c), jnp.float32),
        grid=(m // tm,),
        in_specs=[
            pl.BlockSpec((tm, k), lambda i: (i, 0)),   # row tile of patches
            pl.BlockSpec((k, c), lambda i: (0, 0)),    # weight pinned in VMEM
            pl.BlockSpec((1, c), lambda i: (0, 0)),    # bias pinned in VMEM
        ],
        out_specs=pl.BlockSpec((tm, c), lambda i: (i, 0)),
        compiler_params=pltpu.CompilerParams(
            dimension_semantics=("parallel",)),
    )(xp, w, b)


# --------------------------------------------------------------------------------------
# Forward pass (glue reshapes in JAX, all FLOPs in the Pallas kernel)
# --------------------------------------------------------------------------------------

@functools.partial(jax.jit, static_argnames=("patch_size", "win_size"))
def patch_embeddings_forward(x, params, *, patch_size, win_size):
    n, cin, H, W = x.shape
    p, win = patch_size, win_size
    hp, wp = H // p, W // p
    m1, m2 = hp // win, wp // win
    k = cin * p * p
    c = params["w"].shape[1]

    # im2col with row index (((n*m1 + i)*m2 + j)*win + wh)*win + ww and column index
    # (cin*p + kh)*p + kw, i.e. rows come out directly in the Swin window layout and
    # columns match the Conv2d weight flatten order.
    # TODO(synk): this transpose is one XLA pass over the (small) input; folding it into the
    # kernel would need an in-kernel multi-axis transpose that Mosaic does not lower well.
    xp = x.reshape(n, cin, m1, win, p, m2, win, p)
    xp = xp.transpose(0, 2, 5, 3, 6, 1, 4, 7).reshape(n * m1 * m2 * win * win, k)

    tm = _pick_row_tile(xp.shape[0])
    y = _patch_embed_matmul(xp, params["w"], params["b"], tm)

    # norm_layer is None in the reference default -> identity.
    # TODO(synk): non-None norm_layer branch not implemented (reference constructs with None).
    # The einops rearrange 'N (m1 H) (m2 W) C -> N (m1 m2) (H W) C' is already realized by the
    # row ordering above, so this reshape is free (no data movement).
    return y.reshape(n, m1 * m2, win * win, c)


# --------------------------------------------------------------------------------------
# Pure-JAX reference (independent path: real conv + permute + rearrange) for validation
# --------------------------------------------------------------------------------------

def _reference_patch_embeddings(x, conv_w, conv_b, patch_size, win_size):
    p, win = patch_size, win_size
    y = jax.lax.conv_general_dilated(
        x, conv_w, window_strides=(p, p), padding="VALID",
        dimension_numbers=("NCHW", "OIHW", "NCHW"),
        precision=jax.lax.Precision.HIGHEST)
    y = y + conv_b.reshape(1, -1, 1, 1)
    y = jnp.transpose(y, (0, 2, 3, 1))                       # N, Hp, Wp, C
    n, hp, wp, c = y.shape
    m1, m2 = hp // win, wp // win
    y = y.reshape(n, m1, win, m2, win, c).transpose(0, 1, 3, 2, 4, 5)
    return y.reshape(n, m1 * m2, win * win, c)


# --------------------------------------------------------------------------------------
# Main
# --------------------------------------------------------------------------------------

if __name__ == "__main__":
    patch_size, win_size = 4, 7                  # reference defaults
    in_channels, out_channels = 3, 48            # reference defaults
    img = patch_size * win_size * 2              # 56 -> 2x2 windows of 7x7 patches each
    batch = 2

    key = jax.random.PRNGKey(0)
    kw, kb, kx = jax.random.split(key, 3)
    fan_in = in_channels * patch_size * patch_size
    bound = 1.0 / float(np.sqrt(fan_in))         # PyTorch Conv2d default init scale
    conv_w = jax.random.uniform(kw, (out_channels, in_channels, patch_size, patch_size),
                                minval=-bound, maxval=bound, dtype=jnp.float32)
    conv_b = jax.random.uniform(kb, (out_channels,), minval=-bound, maxval=bound,
                                dtype=jnp.float32)
    params = {
        "w": conv_w.reshape(out_channels, fan_in).T.astype(jnp.bfloat16),  # (K, C) bf16
        "b": conv_b.reshape(1, out_channels).astype(jnp.float32),          # (1, C) f32
    }

    x = jax.random.normal(kx, (batch, in_channels, img, img), jnp.float32)

    out = patch_embeddings_forward(x, params, patch_size=patch_size, win_size=win_size)
    out = jax.block_until_ready(out)

    m = (img // patch_size) // win_size
    assert out.shape == (batch, m * m, win_size * win_size, out_channels), out.shape
    assert bool(jnp.all(jnp.isfinite(out)))

    ref = _reference_patch_embeddings(x, conv_w, conv_b, patch_size, win_size)
    assert bool(jnp.allclose(out, ref, atol=5e-2, rtol=5e-2)), \
        float(jnp.max(jnp.abs(out - ref)))

    print("KERNEL_OK")
</pallas_src>

<mosaic_0001>
module attributes {stable_mosaic.version = 11 : i64} {
  func.func @_patch_embed_kernel(%arg0: i32, %arg1: memref<56x48xf32, #tpu.memory_space<vmem>>, %arg2: memref<48x48xbf16, #tpu.memory_space<vmem>>, %arg3: memref<1x48xf32, #tpu.memory_space<vmem>>, %arg4: memref<56x48xf32, #tpu.memory_space<vmem>>) attributes {dimension_semantics = [#tpu.dimension_semantics<parallel>], iteration_bounds = array<i64: 7>, scalar_prefetch = 0 : i64, scratch_operands = 0 : i64, tpu.core_type = #tpu.core_type<tc>, window_params = [{transform_indices = @transform_0, window_bounds = array<i64: 56, 48>}, {pipeline_mode = #tpu.pipeline_mode<synchronous>, transform_indices = @transform_1, window_bounds = array<i64: 48, 48>}, {pipeline_mode = #tpu.pipeline_mode<synchronous>, transform_indices = @transform_2, window_bounds = array<i64: 1, 48>}, {transform_indices = @transform_3, window_bounds = array<i64: 56, 48>}]} {
    %c0 = arith.constant 0 : index
    %c0_0 = arith.constant 0 : index
    %0 = vector.load %arg1[%c0, %c0_0] : memref<56x48xf32, #tpu.memory_space<vmem>>, vector<56x48xf32>
    %1 = arith.truncf %0 : vector<56x48xf32> to vector<56x48xbf16>
    %c0_1 = arith.constant 0 : index
    %c0_2 = arith.constant 0 : index
    %2 = vector.load %arg2[%c0_1, %c0_2] : memref<48x48xbf16, #tpu.memory_space<vmem>>, vector<48x48xbf16>
    %cst = arith.constant dense<0.000000e+00> : vector<56x48xf32>
    %3 = tpu.matmul %1, %2, %cst {dimension_numbers = #tpu.dot_dimension_numbers<[1], [0], [0], [1], [0, 0, 1, 1], [], []>} : vector<56x48xbf16>, vector<48x48xbf16>, vector<56x48xf32> -> vector<56x48xf32>
    %c0_3 = arith.constant 0 : index
    %c0_4 = arith.constant 0 : index
    %4 = vector.load %arg3[%c0_3, %c0_4] : memref<1x48xf32, #tpu.memory_space<vmem>>, vector<1x48xf32>
    %5 = vector.broadcast %4 : vector<1x48xf32> to vector<56x48xf32>
    %6 = arith.addf %3, %5 : vector<56x48xf32>
    %c0_5 = arith.constant 0 : index
    %c0_6 = arith.constant 0 : index
    %7 = vector.load %arg4[%c0_5, %c0_6] : memref<56x48xf32, #tpu.memory_space<vmem>>, vector<56x48xf32>
    tpu.vector_store %arg4[%c0_5, %c0_6], %6 {strides = array<i32>} : memref<56x48xf32, #tpu.memory_space<vmem>>, vector<56x48xf32>,
    return
  }
  func.func @transform_0(%arg0: i32) -> (i32, i32) {
    %c0_i32 = arith.constant 0 : i32
    %c0_i32_0 = arith.constant 0 : i32
    return %arg0, %c0_i32 : i32, i32
  }
  func.func @transform_1(%arg0: i32) -> (i32, i32) {
    %c0_i32 = arith.constant 0 : i32
    %c0_i32_0 = arith.constant 0 : i32
    %c0_i32_1 = arith.constant 0 : i32
    return %c0_i32, %c0_i32_0 : i32, i32
  }
  func.func @transform_2(%arg0: i32) -> (i32, i32) {
    %c0_i32 = arith.constant 0 : i32
    %c0_i32_0 = arith.constant 0 : i32
    %c0_i32_1 = arith.constant 0 : i32
    return %c0_i32, %c0_i32_0 : i32, i32
  }
  func.func @transform_3(%arg0: i32) -> (i32, i32) {
    %c0_i32 = arith.constant 0 : i32
    %c0_i32_0 = arith.constant 0 : i32
    return %arg0, %c0_i32 : i32, i32
  }
}

</mosaic_0001>

<bundles_post_ra>
// kernel: patch_embeddings_forward.1
= control target key start
LH: loop header
LB: loop body
LE: loop exit
PB: predicated region body
PF: predicated region fallthrough
CT: control target
= control target key end

     0   :  { %s392_s12 = smov 0   ;;  %s435_s0 = inlined_call_operand.vmem [shape: f32[392,48], index: 0, kind: input, shape index: {}]   ;;  %s436_s1 = inlined_call_operand.vmem [shape: bf16[48,48], index: 1, kind: input, shape index: {}]   ;;  %s437_s2 = inlined_call_operand.vmem [shape: f32[1,48], index: 2, kind: input, shape index: {}]   ;;  %s438_s3 = inlined_call_operand.vmem [shape: f32[392,48], index: 3, kind: output, shape index: {}]  }
   0x1 LB: > { %s318_s13 = sadd.s32 4294967295, %s370_s12   ;;  %p322_p0 = scmp.ge.s32.totalorder %s370_s12, 1  ;;  %s370_s12 = sphi %s392_s12, %s13_s12  }
   0x2   : > { %p138_p1 = scmp.lt.s32.totalorder %s370_s12, 8 }
   0x4   : > { %p139_p2 = pnand %p322_p0, %p138_p1 }
   0x5   : > { %s162_s16 = smul.u32 (!%p139_p2), 7, %s318_s13 }
   0x6   : > { %142 = sbr.rel (%p139_p2) target bundleno = 167 (0xa7), region = 32 }
   0x7   : > { %p163_p3 = scmp.lt.s32.totalorder (!%p139_p2), %s162_s16, 48 }
   0xb   : > { %v345_v0 = vld [vmem:[%s436_s1 + $0x10] sm:$0xff]  ;;  %v344_v1 = vld [vmem:[%s436_s1 + $0x8] sm:$0xff]  ;;  %s440_s16 = smov (!%p163_p3, %s162_s16), 48  ;;  %v343_v2 = vld [vmem:[%s436_s1] sm:$0xff]  ;;  %vm214_vm0 = vcmask 392192  }
   0xc   : > { %232 = vmatpush.bf16.msra.mxu0 %v345_v0  ;;  %346 = vmatpush.bf16.msra.mxu1 %v345_v0  ;;  %s323_s21 = sshll.u32 %s440_s16, 3  ;;  %v363_v14 = vld [vmem:[%s437_s2] ss:$0 sm:$0xff] }
   0xd   : > { %347 = vmatpush.bf16.msra.mxu2 %v345_v0  ;;  %348 = vmatpush.bf16.msra.mxu3 %v345_v0  ;;  %s166_s24 = scalar_lea.vmem %s435_s0, %s323_s21  ;;  %s172_s29 = scalar_lea.vmem %s438_s3, %s323_s21 }
   0xe   : > { %v175_v3 = vld [vmem:[%s166_s24] sm:$0xff]  ;;  %v176_v4 = vld [vmem:[%s166_s24 + $0x8] sm:$0xff]  ;;  %v177_v5 = vld [vmem:[%s166_s24 + $0x10] sm:$0xff] }
   0xf   : > { %v182_v6 = vpack.c.bf16 %v176_v4, %v175_v3  ;;  %v178_v7 = vld [vmem:[%s166_s24 + $0x18] sm:$0xff]  ;;  %v179_v8 = vld [vmem:[%s166_s24 + $0x20] sm:$0xff]  ;;  %v180_v9 = vld [vmem:[%s166_s24 + $0x28] sm:$0xff] }
  0x10   : > { %233 = vmatpush.bf16.msra.mxu0 %v344_v1  ;;  %349 = vmatpush.bf16.msra.mxu1 %v344_v1  ;;  %v183_v10 = vpack.c.bf16 %v178_v7, %v177_v5  ;;  %v184_v11 = vpack.c.bf16 %v180_v9, %v179_v8  ;;  %v181_v12 = vld [vmem:[%s166_s24 + $0x30] sm:$0xff] }
  0x11   : > { %350 = vmatpush.bf16.msra.mxu2 %v344_v1  ;;  %351 = vmatpush.bf16.msra.mxu3 %v344_v1  ;;  %v185_v13 = vpack.c.bf16 %v181_v12, %v181_v12 }
  0x14   : > { %234 = vmatpush.bf16.msra.mxu0 %v343_v2  ;;  %352 = vmatpush.bf16.msra.mxu1 %v343_v2 }
  0x15   : > { %353 = vmatpush.bf16.msra.mxu2 %v343_v2  ;;  %354 = vmatpush.bf16.msra.mxu3 %v343_v2 }
  0x17   : > { %337 = vmatmul.msk.bf16.vlgmr.msra.gmra.mxu0 %vm214_vm0, %v182_v6  ;;  %338 = vmatmul.msk.bf16.vlgmr.msra.gmra.mxu1 %vm214_vm0, %v183_v10 }
  0x18   : > { %339 = vmatmul.msk.bf16.vlgmr.msra.gmra.mxu2 %vm214_vm0, %v184_v11  ;;  %340 = vmatmul.msk.bf16.vlgmr.msra.gmra.mxu3 %vm214_vm0, %v185_v13 }
  0x94   : > { %v236_v15 = vpop.f32.mrf.mxu0  ;;  %v241_v16 = vpop.f32.mrf.mxu1 }
  0x95   : > { %v237_v17 = vadd.f32 %v363_v14, %v236_v15  ;;  %v242_v18 = vadd.f32 %v363_v14, %v241_v16 }
  0x97   : > { %255 = vst.msk [vmem:[%s172_s29] sm:$0xff] %vm214_vm0, %v237_v17 }
  0x98   : > { %257 = vst.msk [vmem:[%s172_s29 + $0x10] sm:$0xff] %vm214_vm0, %v242_v18 }
  0x9b   : > { %v246_v19 = vpop.f32.mrf.mxu2  ;;  %v251_v20 = vpop.f32.mrf.mxu3 }
  0x9c   : > { %v247_v21 = vadd.f32 %v363_v14, %v246_v19  ;;  %v252_v22 = vadd.f32 %v363_v14, %v251_v20  ;;  %v238_v23 = vpop.f32.mrf.mxu0  ;;  %v243_v24 = vpop.f32.mrf.mxu1 }
  0x9d   : > { %v239_v25 = vadd.f32 %v363_v14, %v238_v23  ;;  %v244_v26 = vadd.f32 %v363_v14, %v243_v24 }
  0x9e   : > { %259 = vst.msk [vmem:[%s172_s29 + $0x20] sm:$0xff] %vm214_vm0, %v247_v21 }
  0x9f   : > { %261 = vst.msk [vmem:[%s172_s29 + $0x30] sm:$0xff] %vm214_vm0, %v252_v22 }
  0xa0   : > { %256 = vst.msk [vmem:[%s172_s29 + $0x8] sm:$0xff] %vm214_vm0, %v239_v25 }
  0xa1   : > { %258 = vst.msk [vmem:[%s172_s29 + $0x18] sm:$0xff] %vm214_vm0, %v244_v26 }
  0xa3   : > { %v248_v27 = vpop.f32.mrf.mxu2  ;;  %v253_v28 = vpop.f32.mrf.mxu3 }
  0xa4   : > { %v249_v29 = vadd.f32 %v363_v14, %v248_v27 }
  0xa6   : > { %260 = vst.msk [vmem:[%s172_s29 + $0x28] sm:$0xff] %vm214_vm0, %v249_v29 }
  0xa7 PF: > { %s13_s12 = sadd.s32 1, %s370_s12  }
  0xa8   : > { %p10_p4 = scmp.ge.s32.totalorder %s13_s12, 9  }
  0xaa   :  { %12 = sbr.rel (!%p10_p4) target bundleno = 1 (0x1), region = 62 }

</bundles_post_ra>
